<compile_context>
chip_gen: v5e
topology: v5e:2x2
jax: 0.10.0
libtpu: 0.0.40
codegen_flags: <defaults>
</compile_context>

<pallas_src>
import numpy as np

import jax
import jax.numpy as jnp
from jax.experimental import pallas as pl
from jax.experimental.pallas import tpu as pltpu


# ----------------------- one-time weight preprocessing ----------------------

def _deconv_mcat(w, w_in, n_pad):
    """ConvTranspose2d(k=3,s=2,p=1,op=1): lane-concatenated x-banded matrices.

    w: (Cin, Cout, 3, 3) numpy.  Returns (W_in*Cin, 3*n_pad) with block ky at
    columns [ky*n_pad, ...):  M[(xi*Cin+ci), (xo*Cout+co)] = w[ci, co, ky, xo-2xi+1]."""
    cin, cout = int(w.shape[0]), int(w.shape[1])
    w_out = 2 * w_in
    m = np.zeros((w_in * cin, 3 * n_pad), np.float32)
    for ky in range(3):
        for xi in range(w_in):
            for kx in range(3):
                xo = 2 * xi - 1 + kx
                if 0 <= xo < w_out:
                    m[xi * cin:(xi + 1) * cin,
                      ky * n_pad + xo * cout: ky * n_pad + (xo + 1) * cout] = w[:, :, ky, kx]
    return m


def _conv_mcat(w, w_in, n_pad):
    """Conv2d(k=3,s=1,p=1).  w: (Cout, Cin, 3, 3) numpy."""
    cout, cin = int(w.shape[0]), int(w.shape[1])
    m = np.zeros((w_in * cin, 3 * n_pad), np.float32)
    for ky in range(3):
        for xo in range(w_in):
            for kx in range(3):
                xi = xo + kx - 1
                if 0 <= xi < w_in:
                    m[xi * cin:(xi + 1) * cin,
                      ky * n_pad + xo * cout: ky * n_pad + (xo + 1) * cout] = w[:, :, ky, kx].T
    return m


def _deconv_rmats(h_in, batch):
    """0/1 row-placement matrices (kron'd with I_B) for  yo = 2*yi - 1 + ky."""
    h_out = 2 * h_in
    out = np.zeros((3, h_out * batch, h_in * batch), np.float32)
    for ky in range(3):
        r = np.zeros((h_out, h_in), np.float32)
        for yi in range(h_in):
            yo = 2 * yi - 1 + ky
            if 0 <= yo < h_out:
                r[yo, yi] = 1.0
        out[ky] = np.kron(r, np.eye(batch, dtype=np.float32))
    return out


def _conv_rmats(h, batch):
    """0/1 row-placement matrices (kron'd with I_B) for  yi = yo + ky - 1."""
    out = np.zeros((3, h * batch, h * batch), np.float32)
    for ky in range(3):
        r = np.zeros((h, h), np.float32)
        for yo in range(h):
            yi = yo + ky - 1
            if 0 <= yi < h:
                r[yo, yi] = 1.0
        out[ky] = np.kron(r, np.eye(batch, dtype=np.float32))
    return out


def prepare_decoder(params, conv_size, batch, n_pad=128):
    """Hoisted, one-time (numpy) conversion of PyTorch-layout params -> packed operands."""
    fc_w = np.asarray(params["fc_w"], np.float32)
    fc_b = np.asarray(params["fc_b"], np.float32)
    latent, fc_dim = fc_w.shape
    h0 = w0 = conv_size
    c0 = fc_dim // (h0 * w0)
    wc0 = w0 * c0

    # fc weight row-stacked per image row y, columns permuted to (x, c) order,
    # so that  kron(I_h0, x) @ fcw_stack  is already in (y*B+b, x*C+c) layout.
    lane = np.arange(wc0)
    x_idx, c_idx = lane // c0, lane % c0
    fcw_stack = np.zeros((h0 * latent, wc0), np.float32)
    fcb_tile = np.zeros((h0 * batch, wc0), np.float32)
    for y in range(h0):
        cols = c_idx * (h0 * w0) + y * w0 + x_idx            # original torch column idx
        fcw_stack[y * latent:(y + 1) * latent, :] = fc_w[:, cols]
        fcb_tile[y * batch:(y + 1) * batch, :] = fc_b[cols][None, :]

    m_list, r_list, b_list, layer_cfg = [], [], [], []
    h, w = h0, w0
    for (w_pt, b) in params["deconvs"]:
        w_np = np.asarray(w_pt, np.float32)
        b_np = np.asarray(b, np.float32)
        cin, cout = int(w_np.shape[0]), int(w_np.shape[1])
        assert 2 * w * cout <= n_pad
        m_list.append(_deconv_mcat(w_np, w, n_pad))          # (w*cin, 3*n_pad)
        r_list.append(_deconv_rmats(h, batch))               # (3, 2h*B, h*B)
        brow = np.zeros((n_pad,), np.float32)
        brow[:2 * w * cout] = np.tile(b_np, 2 * w)
        b_list.append(brow)
        layer_cfg.append(dict(k=w * cin, rows_in=h * batch, rows_out=2 * h * batch))
        h, w = 2 * h, 2 * w

    w_np = np.asarray(params["pred_w"], np.float32)
    b_np = np.asarray(params["pred_b"], np.float32)
    cout, cin = int(w_np.shape[0]), int(w_np.shape[1])
    assert w * cout <= n_pad
    m_list.append(_conv_mcat(w_np, w, n_pad))                # (w*cin, 3*n_pad)
    r_list.append(_conv_rmats(h, batch))                     # (3, h*B, h*B)
    brow = np.zeros((n_pad,), np.float32)
    brow[:w * cout] = np.tile(b_np, w)
    b_list.append(brow)
    layer_cfg.append(dict(k=w * cin, rows_in=h * batch, rows_out=h * batch))

    n_layers = len(layer_cfg)
    k_max = max(c["k"] for c in layer_cfg)
    rows_max = max(c["rows_out"] for c in layer_cfg)

    m_all = np.zeros((n_layers, k_max, 3 * n_pad), np.float32)
    r_all = np.zeros((n_layers, 3, rows_max, rows_max), np.float32)
    for li in range(n_layers):
        m_all[li, :m_list[li].shape[0], :] = m_list[li]
        r_all[li, :, :r_list[li].shape[1], :r_list[li].shape[2]] = r_list[li]
    bias_all = np.stack(b_list)                              # (n_layers, n_pad)

    operands = (
        jnp.asarray(fcw_stack, jnp.bfloat16),   # (H0*latent, W0*C0)
        jnp.asarray(fcb_tile, jnp.float32),     # (H0*B,      W0*C0)
        jnp.asarray(m_all, jnp.bfloat16),       # (L, k_max,  3*n_pad)
        jnp.asarray(r_all, jnp.bfloat16),       # (L, 3, rows_max, rows_max)  (exact 0/1)
        jnp.asarray(bias_all, jnp.float32),     # (L, n_pad)
    )
    meta = dict(batch=batch, h0=h0, latent=latent, n_pad=n_pad,
                h_out=h, w_out=w, c_out=cout, layer_cfg=layer_cfg)
    return operands, meta


# --------------------------------- kernel -----------------------------------

def _make_decoder_kernel(layer_cfg, n_pad):
    n_layers = len(layer_cfg)

    def kernel(xb_ref, fcw_ref, fcb_ref, m_ref, r_ref, bias_ref, out_ref):
        # fc + ReLU, emitted directly in the (y*B + b, x*C + c) layout
        # (block-diagonal LHS built in the wrapper -> no in-kernel placement).
        a32 = jnp.dot(xb_ref[...], fcw_ref[...],
                      preferred_element_type=jnp.float32)
        a32 = jnp.maximum(a32 + fcb_ref[...], 0.0)
        a = a32.astype(jnp.bfloat16)

        bias_all = bias_ref[...]                             # (L, n_pad) f32

        for li, cfg in enumerate(layer_cfg):
            k, r_in, r_out = cfg["k"], cfg["rows_in"], cfg["rows_out"]
            # One wide banded matmul: [Y_0 | Y_1 | Y_2] = A @ [M_0 | M_1 | M_2]
            y_cat = jnp.dot(a[:, :k], m_ref[li, :k, :],
                            preferred_element_type=jnp.float32)   # (r_in, 3*n_pad)
            # y-direction placement via tiny 0/1 matmuls on 128-aligned slices.
            acc = jnp.zeros((r_out, n_pad), jnp.float32)
            for ky in range(3):
                yk = y_cat[:, ky * n_pad:(ky + 1) * n_pad].astype(jnp.bfloat16)
                acc = acc + jnp.dot(r_ref[li, ky, :r_out, :r_in], yk,
                                    preferred_element_type=jnp.float32)
            acc = acc + bias_all[li:li + 1, :]
            if li < n_layers - 1:
                a = jnp.maximum(acc, 0.0).astype(jnp.bfloat16)        # ReLU
            else:
                # Sigmoid: exp + approx reciprocal both run on the EUP slot.
                a = pl.reciprocal(1.0 + jnp.exp(-acc), approx=True)

        out_ref[...] = a.astype(out_ref.dtype)

    return kernel


# --------------------------------- wrapper ----------------------------------

def _full_spec(shape):
    nd = len(shape)
    return pl.BlockSpec(shape, lambda i: (0,) * nd)


def decoder_forward(x, operands, meta):
    """x: (B, latent_dim).  Returns (B, output_dim, H, W) NCHW (PyTorch layout)."""
    fcw, fcb, m_all, r_all, bias_all = operands
    batch, h0, n_pad = meta["batch"], meta["h0"], meta["n_pad"]
    hf, wf, cf = meta["h_out"], meta["w_out"], meta["c_out"]
    layer_cfg = meta["layer_cfg"]

    # Block-diagonal LHS kron(I_H0, x): the fc matmul lands directly in the
    # (y*B + b, x*C + c) activation layout (pure layout plumbing, tiny).
    x_blk = jnp.kron(jnp.eye(h0, dtype=x.dtype), x).astype(jnp.bfloat16)

    inputs = (x_blk, fcw, fcb, m_all, r_all, bias_all)
    out_rows = hf * batch

    # Advisory cost estimate (matmul flops + sigmoid transcendentals).
    flops = 2 * x_blk.shape[0] * x_blk.shape[1] * fcw.shape[1]
    for cfg in layer_cfg:
        flops += 2 * cfg["rows_in"] * cfg["k"] * 3 * n_pad            # banded matmul
        flops += 3 * 2 * cfg["rows_out"] * cfg["rows_in"] * n_pad     # row placement
    bytes_accessed = sum(int(a.size) * a.dtype.itemsize for a in inputs) \
        + out_rows * n_pad * 4
    cost = pl.CostEstimate(flops=int(flops), transcendentals=int(out_rows * n_pad),
                           bytes_accessed=int(bytes_accessed))

    out2d = pl.pallas_call(
        _make_decoder_kernel(layer_cfg, n_pad),
        out_shape=jax.ShapeDtypeStruct((out_rows, n_pad), jnp.float32),
        grid=(1,),
        in_specs=[_full_spec(a.shape) for a in inputs],
        out_specs=_full_spec((out_rows, n_pad)),
        compiler_params=pltpu.CompilerParams(dimension_semantics=("arbitrary",)),
        cost_estimate=cost,
    )(*inputs)

    # (y*B + b, x*C + c) -> NCHW; drop lane padding.  Tiny transform outside.
    out2d = out2d[:, :wf * cf]
    return out2d.reshape(hf, batch, wf, cf).transpose(1, 3, 0, 2)


# ----------------------------- pure-JAX reference ----------------------------

def decoder_reference(x, params, conv_size):
    h = jnp.maximum(x @ params["fc_w"] + params["fc_b"], 0.0)
    B = x.shape[0]
    C = h.shape[1] // (conv_size * conv_size)
    h = h.reshape(B, C, conv_size, conv_size)
    dn = ("NCHW", "OIHW", "NCHW")
    for (w_pt, b) in params["deconvs"]:
        rhs = jnp.flip(w_pt, axis=(2, 3)).transpose(1, 0, 2, 3)  # (Cout,Cin,3,3)
        h = jax.lax.conv_general_dilated(
            h, rhs, window_strides=(1, 1), padding=((1, 2), (1, 2)),
            lhs_dilation=(2, 2), dimension_numbers=dn)
        h = jnp.maximum(h + b.reshape(1, -1, 1, 1), 0.0)
    h = jax.lax.conv_general_dilated(
        h, params["pred_w"], window_strides=(1, 1), padding=((1, 1), (1, 1)),
        dimension_numbers=dn)
    return jax.nn.sigmoid(h + params["pred_b"].reshape(1, -1, 1, 1))


# ----------------------------------- main ------------------------------------

if __name__ == "__main__":
    batch = 2
    latent_dim = 32
    image_size = 16
    conv_dims = [8, 16]
    output_dim = 3

    conv_size = image_size // 2 ** len(conv_dims)                  # 4
    fc_dim = conv_size * conv_size * conv_dims[-1]                 # 256

    key = jax.random.PRNGKey(0)
    keys = jax.random.split(key, 16)
    s = 0.05

    params = {
        "fc_w": s * jax.random.normal(keys[0], (latent_dim, fc_dim), jnp.float32),
        "fc_b": s * jax.random.normal(keys[1], (fc_dim,), jnp.float32),
        "deconvs": [],
    }
    prev = conv_dims[-1]
    ki = 2
    for cd in conv_dims[::-1]:
        # PyTorch ConvTranspose2d weight layout: (Cin, Cout, kH, kW)
        w = s * jax.random.normal(keys[ki], (prev, cd, 3, 3), jnp.float32)
        b = s * jax.random.normal(keys[ki + 1], (cd,), jnp.float32)
        params["deconvs"].append((w, b))
        prev = cd
        ki += 2
    # PyTorch Conv2d weight layout: (Cout, Cin, kH, kW)
    params["pred_w"] = s * jax.random.normal(keys[ki], (output_dim, prev, 3, 3), jnp.float32)
    params["pred_b"] = s * jax.random.normal(keys[ki + 1], (output_dim,), jnp.float32)

    x = jax.random.normal(keys[15], (batch, latent_dim), jnp.float32)

    # One-time (hoisted, numpy) weight preprocessing, then one fused kernel call.
    operands, meta = prepare_decoder(params, conv_size, batch)
    fwd = jax.jit(lambda xx: decoder_forward(xx, operands, meta))

    out = jax.block_until_ready(fwd(x))
    assert out.shape == (batch, output_dim, image_size, image_size), out.shape

    ref = jax.block_until_ready(decoder_reference(x, params, conv_size))
    # bf16 matmul operands + approx-reciprocal sigmoid -> relaxed tolerance.
    assert jnp.allclose(out, ref, atol=1e-2, rtol=1e-2), \
        float(jnp.max(jnp.abs(out - ref)))

    print("KERNEL_OK")
</pallas_src>

<mosaic_0001>
module attributes {stable_mosaic.version = 11 : i64} {
  func.func @kernel(%arg0: i32, %arg1: memref<8x128xbf16, #tpu.memory_space<vmem>>, %arg2: memref<128x64xbf16, #tpu.memory_space<vmem>>, %arg3: memref<8x64xf32, #tpu.memory_space<vmem>>, %arg4: memref<3x128x384xbf16, #tpu.memory_space<vmem>>, %arg5: memref<3x3x32x32xbf16, #tpu.memory_space<vmem>>, %arg6: memref<3x128xf32, #tpu.memory_space<vmem>>, %arg7: memref<32x128xf32, #tpu.memory_space<vmem>>) attributes {dimension_semantics = [#tpu.dimension_semantics<arbitrary>], iteration_bounds = array<i64: 1>, scalar_prefetch = 0 : i64, scratch_operands = 0 : i64, tpu.core_type = #tpu.core_type<tc>, window_params = [{pipeline_mode = #tpu.pipeline_mode<synchronous>, transform_indices = @transform_0, window_bounds = array<i64: 8, 128>}, {pipeline_mode = #tpu.pipeline_mode<synchronous>, transform_indices = @transform_1, window_bounds = array<i64: 128, 64>}, {pipeline_mode = #tpu.pipeline_mode<synchronous>, transform_indices = @transform_2, window_bounds = array<i64: 8, 64>}, {pipeline_mode = #tpu.pipeline_mode<synchronous>, transform_indices = @transform_3, window_bounds = array<i64: 3, 128, 384>}, {pipeline_mode = #tpu.pipeline_mode<synchronous>, transform_indices = @transform_4, window_bounds = array<i64: 3, 3, 32, 32>}, {pipeline_mode = #tpu.pipeline_mode<synchronous>, transform_indices = @transform_5, window_bounds = array<i64: 3, 128>}, {pipeline_mode = #tpu.pipeline_mode<synchronous>, transform_indices = @transform_6, window_bounds = array<i64: 32, 128>}]} {
    %c0 = arith.constant 0 : index
    %c0_0 = arith.constant 0 : index
    %0 = vector.load %arg1[%c0, %c0_0] : memref<8x128xbf16, #tpu.memory_space<vmem>>, vector<8x128xbf16>
    %c0_1 = arith.constant 0 : index
    %c0_2 = arith.constant 0 : index
    %1 = vector.load %arg2[%c0_1, %c0_2] : memref<128x64xbf16, #tpu.memory_space<vmem>>, vector<128x64xbf16>
    %cst = arith.constant dense<0.000000e+00> : vector<8x64xf32>
    %2 = tpu.matmul %0, %1, %cst {dimension_numbers = #tpu.dot_dimension_numbers<[1], [0], [0], [1], [0, 0, 1, 1], [], []>} : vector<8x128xbf16>, vector<128x64xbf16>, vector<8x64xf32> -> vector<8x64xf32>
    %c0_3 = arith.constant 0 : index
    %c0_4 = arith.constant 0 : index
    %3 = vector.load %arg3[%c0_3, %c0_4] : memref<8x64xf32, #tpu.memory_space<vmem>>, vector<8x64xf32>
    %4 = arith.addf %2, %3 : vector<8x64xf32>
    %cst_5 = arith.constant 0.000000e+00 : f32
    %5 = vector.broadcast %cst_5 : f32 to vector<8x64xf32>
    %6 = arith.maximumf %4, %5 : vector<8x64xf32>
    %7 = arith.truncf %6 : vector<8x64xf32> to vector<8x64xbf16>
    %c0_6 = arith.constant 0 : index
    %c0_7 = arith.constant 0 : index
    %8 = vector.load %arg6[%c0_6, %c0_7] : memref<3x128xf32, #tpu.memory_space<vmem>>, vector<3x128xf32>
    %c0_8 = arith.constant 0 : index
    %c0_9 = arith.constant 0 : index
    %c0_10 = arith.constant 0 : index
    %9 = vector.load %arg4[%c0_8, %c0_9, %c0_10] : memref<3x128x384xbf16, #tpu.memory_space<vmem>>, vector<1x64x384xbf16>
    %10 = vector.shape_cast %9 : vector<1x64x384xbf16> to vector<64x384xbf16>
    %cst_11 = arith.constant dense<0.000000e+00> : vector<8x384xf32>
    %11 = tpu.matmul %7, %10, %cst_11 {dimension_numbers = #tpu.dot_dimension_numbers<[1], [0], [0], [1], [0, 0, 1, 1], [], []>} : vector<8x64xbf16>, vector<64x384xbf16>, vector<8x384xf32> -> vector<8x384xf32>
    %cst_12 = arith.constant 0.000000e+00 : f32
    %12 = vector.broadcast %cst_12 : f32 to vector<16x128xf32>
    %13 = vector.extract_strided_slice %11 {offsets = [0, 0], sizes = [8, 128], strides = [1, 1]} : vector<8x384xf32> to vector<8x128xf32>
    %14 = arith.truncf %13 : vector<8x128xf32> to vector<8x128xbf16>
    %c0_13 = arith.constant 0 : index
    %c0_14 = arith.constant 0 : index
    %c0_15 = arith.constant 0 : index
    %c0_16 = arith.constant 0 : index
    %15 = vector.load %arg5[%c0_13, %c0_14, %c0_15, %c0_16] : memref<3x3x32x32xbf16, #tpu.memory_space<vmem>>, vector<1x1x16x8xbf16>
    %16 = vector.shape_cast %15 : vector<1x1x16x8xbf16> to vector<16x8xbf16>
    %cst_17 = arith.constant dense<0.000000e+00> : vector<16x128xf32>
    %17 = tpu.matmul %16, %14, %cst_17 {dimension_numbers = #tpu.dot_dimension_numbers<[1], [0], [0], [1], [0, 0, 1, 1], [], []>} : vector<16x8xbf16>, vector<8x128xbf16>, vector<16x128xf32> -> vector<16x128xf32>
    %18 = arith.addf %12, %17 : vector<16x128xf32>
    %19 = vector.extract_strided_slice %11 {offsets = [0, 128], sizes = [8, 128], strides = [1, 1]} : vector<8x384xf32> to vector<8x128xf32>
    %20 = arith.truncf %19 : vector<8x128xf32> to vector<8x128xbf16>
    %c0_18 = arith.constant 0 : index
    %c1 = arith.constant 1 : index
    %c0_19 = arith.constant 0 : index
    %c0_20 = arith.constant 0 : index
    %21 = vector.load %arg5[%c0_18, %c1, %c0_19, %c0_20] : memref<3x3x32x32xbf16, #tpu.memory_space<vmem>>, vector<1x1x16x8xbf16>
    %22 = vector.shape_cast %21 : vector<1x1x16x8xbf16> to vector<16x8xbf16>
    %cst_21 = arith.constant dense<0.000000e+00> : vector<16x128xf32>
    %23 = tpu.matmul %22, %20, %cst_21 {dimension_numbers = #tpu.dot_dimension_numbers<[1], [0], [0], [1], [0, 0, 1, 1], [], []>} : vector<16x8xbf16>, vector<8x128xbf16>, vector<16x128xf32> -> vector<16x128xf32>
    %24 = arith.addf %18, %23 : vector<16x128xf32>
    %25 = vector.extract_strided_slice %11 {offsets = [0, 256], sizes = [8, 128], strides = [1, 1]} : vector<8x384xf32> to vector<8x128xf32>
    %26 = arith.truncf %25 : vector<8x128xf32> to vector<8x128xbf16>
    %c0_22 = arith.constant 0 : index
    %c2 = arith.constant 2 : index
    %c0_23 = arith.constant 0 : index
    %c0_24 = arith.constant 0 : index
    %27 = vector.load %arg5[%c0_22, %c2, %c0_23, %c0_24] : memref<3x3x32x32xbf16, #tpu.memory_space<vmem>>, vector<1x1x16x8xbf16>
    %28 = vector.shape_cast %27 : vector<1x1x16x8xbf16> to vector<16x8xbf16>
    %cst_25 = arith.constant dense<0.000000e+00> : vector<16x128xf32>
    %29 = tpu.matmul %28, %26, %cst_25 {dimension_numbers = #tpu.dot_dimension_numbers<[1], [0], [0], [1], [0, 0, 1, 1], [], []>} : vector<16x8xbf16>, vector<8x128xbf16>, vector<16x128xf32> -> vector<16x128xf32>
    %30 = arith.addf %24, %29 : vector<16x128xf32>
    %31 = vector.extract_strided_slice %8 {offsets = [0, 0], sizes = [1, 128], strides = [1, 1]} : vector<3x128xf32> to vector<1x128xf32>
    %32 = vector.broadcast %31 : vector<1x128xf32> to vector<16x128xf32>
    %33 = arith.addf %30, %32 : vector<16x128xf32>
    %cst_26 = arith.constant 0.000000e+00 : f32
    %34 = vector.broadcast %cst_26 : f32 to vector<16x128xf32>
    %35 = arith.maximumf %33, %34 : vector<16x128xf32>
    %36 = arith.truncf %35 : vector<16x128xf32> to vector<16x128xbf16>
    %c1_27 = arith.constant 1 : index
    %c0_28 = arith.constant 0 : index
    %c0_29 = arith.constant 0 : index
    %37 = vector.load %arg4[%c1_27, %c0_28, %c0_29] : memref<3x128x384xbf16, #tpu.memory_space<vmem>>, vector<1x128x384xbf16>
    %38 = vector.shape_cast %37 : vector<1x128x384xbf16> to vector<128x384xbf16>
    %cst_30 = arith.constant dense<0.000000e+00> : vector<16x384xf32>
    %39 = tpu.matmul %36, %38, %cst_30 {dimension_numbers = #tpu.dot_dimension_numbers<[1], [0], [0], [1], [0, 0, 1, 1], [], []>} : vector<16x128xbf16>, vector<128x384xbf16>, vector<16x384xf32> -> vector<16x384xf32>
    %cst_31 = arith.constant 0.000000e+00 : f32
    %40 = vector.broadcast %cst_31 : f32 to vector<32x128xf32>
    %41 = vector.extract_strided_slice %39 {offsets = [0, 0], sizes = [16, 128], strides = [1, 1]} : vector<16x384xf32> to vector<16x128xf32>
    %42 = arith.truncf %41 : vector<16x128xf32> to vector<16x128xbf16>
    %c1_32 = arith.constant 1 : index
    %c0_33 = arith.constant 0 : index
    %c0_34 = arith.constant 0 : index
    %c0_35 = arith.constant 0 : index
    %43 = vector.load %arg5[%c1_32, %c0_33, %c0_34, %c0_35] : memref<3x3x32x32xbf16, #tpu.memory_space<vmem>>, vector<1x1x32x16xbf16>
    %44 = vector.shape_cast %43 : vector<1x1x32x16xbf16> to vector<32x16xbf16>
    %cst_36 = arith.constant dense<0.000000e+00> : vector<32x128xf32>
    %45 = tpu.matmul %44, %42, %cst_36 {dimension_numbers = #tpu.dot_dimension_numbers<[1], [0], [0], [1], [0, 0, 1, 1], [], []>} : vector<32x16xbf16>, vector<16x128xbf16>, vector<32x128xf32> -> vector<32x128xf32>
    %46 = arith.addf %40, %45 : vector<32x128xf32>
    %47 = vector.extract_strided_slice %39 {offsets = [0, 128], sizes = [16, 128], strides = [1, 1]} : vector<16x384xf32> to vector<16x128xf32>
    %48 = arith.truncf %47 : vector<16x128xf32> to vector<16x128xbf16>
    %c1_37 = arith.constant 1 : index
    %c1_38 = arith.constant 1 : index
    %c0_39 = arith.constant 0 : index
    %c0_40 = arith.constant 0 : index
    %49 = vector.load %arg5[%c1_37, %c1_38, %c0_39, %c0_40] : memref<3x3x32x32xbf16, #tpu.memory_space<vmem>>, vector<1x1x32x16xbf16>
    %50 = vector.shape_cast %49 : vector<1x1x32x16xbf16> to vector<32x16xbf16>
    %cst_41 = arith.constant dense<0.000000e+00> : vector<32x128xf32>
    %51 = tpu.matmul %50, %48, %cst_41 {dimension_numbers = #tpu.dot_dimension_numbers<[1], [0], [0], [1], [0, 0, 1, 1], [], []>} : vector<32x16xbf16>, vector<16x128xbf16>, vector<32x128xf32> -> vector<32x128xf32>
    %52 = arith.addf %46, %51 : vector<32x128xf32>
    %53 = vector.extract_strided_slice %39 {offsets = [0, 256], sizes = [16, 128], strides = [1, 1]} : vector<16x384xf32> to vector<16x128xf32>
    %54 = arith.truncf %53 : vector<16x128xf32> to vector<16x128xbf16>
    %c1_42 = arith.constant 1 : index
    %c2_43 = arith.constant 2 : index
    %c0_44 = arith.constant 0 : index
    %c0_45 = arith.constant 0 : index
    %55 = vector.load %arg5[%c1_42, %c2_43, %c0_44, %c0_45] : memref<3x3x32x32xbf16, #tpu.memory_space<vmem>>, vector<1x1x32x16xbf16>
    %56 = vector.shape_cast %55 : vector<1x1x32x16xbf16> to vector<32x16xbf16>
    %cst_46 = arith.constant dense<0.000000e+00> : vector<32x128xf32>
    %57 = tpu.matmul %56, %54, %cst_46 {dimension_numbers = #tpu.dot_dimension_numbers<[1], [0], [0], [1], [0, 0, 1, 1], [], []>} : vector<32x16xbf16>, vector<16x128xbf16>, vector<32x128xf32> -> vector<32x128xf32>
    %58 = arith.addf %52, %57 : vector<32x128xf32>
    %59 = vector.extract_strided_slice %8 {offsets = [1, 0], sizes = [1, 128], strides = [1, 1]} : vector<3x128xf32> to vector<1x128xf32>
    %60 = vector.broadcast %59 : vector<1x128xf32> to vector<32x128xf32>
    %61 = arith.addf %58, %60 : vector<32x128xf32>
    %cst_47 = arith.constant 0.000000e+00 : f32
    %62 = vector.broadcast %cst_47 : f32 to vector<32x128xf32>
    %63 = arith.maximumf %61, %62 : vector<32x128xf32>
    %64 = arith.truncf %63 : vector<32x128xf32> to vector<32x128xbf16>
    %c2_48 = arith.constant 2 : index
    %c0_49 = arith.constant 0 : index
    %c0_50 = arith.constant 0 : index
    %65 = vector.load %arg4[%c2_48, %c0_49, %c0_50] : memref<3x128x384xbf16, #tpu.memory_space<vmem>>, vector<1x128x384xbf16>
    %66 = vector.shape_cast %65 : vector<1x128x384xbf16> to vector<128x384xbf16>
    %cst_51 = arith.constant dense<0.000000e+00> : vector<32x384xf32>
    %67 = tpu.matmul %64, %66, %cst_51 {dimension_numbers = #tpu.dot_dimension_numbers<[1], [0], [0], [1], [0, 0, 1, 1], [], []>} : vector<32x128xbf16>, vector<128x384xbf16>, vector<32x384xf32> -> vector<32x384xf32>
    %cst_52 = arith.constant 0.000000e+00 : f32
    %68 = vector.broadcast %cst_52 : f32 to vector<32x128xf32>
    %69 = vector.extract_strided_slice %67 {offsets = [0, 0], sizes = [32, 128], strides = [1, 1]} : vector<32x384xf32> to vector<32x128xf32>
    %70 = arith.truncf %69 : vector<32x128xf32> to vector<32x128xbf16>
    %c2_53 = arith.constant 2 : index
    %c0_54 = arith.constant 0 : index
    %c0_55 = arith.constant 0 : index
    %c0_56 = arith.constant 0 : index
    %71 = vector.load %arg5[%c2_53, %c0_54, %c0_55, %c0_56] : memref<3x3x32x32xbf16, #tpu.memory_space<vmem>>, vector<1x1x32x32xbf16>
    %72 = vector.shape_cast %71 : vector<1x1x32x32xbf16> to vector<32x32xbf16>
    %cst_57 = arith.constant dense<0.000000e+00> : vector<32x128xf32>
    %73 = tpu.matmul %72, %70, %cst_57 {dimension_numbers = #tpu.dot_dimension_numbers<[1], [0], [0], [1], [0, 0, 1, 1], [], []>} : vector<32x32xbf16>, vector<32x128xbf16>, vector<32x128xf32> -> vector<32x128xf32>
    %74 = arith.addf %68, %73 : vector<32x128xf32>
    %75 = vector.extract_strided_slice %67 {offsets = [0, 128], sizes = [32, 128], strides = [1, 1]} : vector<32x384xf32> to vector<32x128xf32>
    %76 = arith.truncf %75 : vector<32x128xf32> to vector<32x128xbf16>
    %c2_58 = arith.constant 2 : index
    %c1_59 = arith.constant 1 : index
    %c0_60 = arith.constant 0 : index
    %c0_61 = arith.constant 0 : index
    %77 = vector.load %arg5[%c2_58, %c1_59, %c0_60, %c0_61] : memref<3x3x32x32xbf16, #tpu.memory_space<vmem>>, vector<1x1x32x32xbf16>
    %78 = vector.shape_cast %77 : vector<1x1x32x32xbf16> to vector<32x32xbf16>
    %cst_62 = arith.constant dense<0.000000e+00> : vector<32x128xf32>
    %79 = tpu.matmul %78, %76, %cst_62 {dimension_numbers = #tpu.dot_dimension_numbers<[1], [0], [0], [1], [0, 0, 1, 1], [], []>} : vector<32x32xbf16>, vector<32x128xbf16>, vector<32x128xf32> -> vector<32x128xf32>
    %80 = arith.addf %74, %79 : vector<32x128xf32>
    %81 = vector.extract_strided_slice %67 {offsets = [0, 256], sizes = [32, 128], strides = [1, 1]} : vector<32x384xf32> to vector<32x128xf32>
    %82 = arith.truncf %81 : vector<32x128xf32> to vector<32x128xbf16>
    %c2_63 = arith.constant 2 : index
    %c2_64 = arith.constant 2 : index
    %c0_65 = arith.constant 0 : index
    %c0_66 = arith.constant 0 : index
    %83 = vector.load %arg5[%c2_63, %c2_64, %c0_65, %c0_66] : memref<3x3x32x32xbf16, #tpu.memory_space<vmem>>, vector<1x1x32x32xbf16>
    %84 = vector.shape_cast %83 : vector<1x1x32x32xbf16> to vector<32x32xbf16>
    %cst_67 = arith.constant dense<0.000000e+00> : vector<32x128xf32>
    %85 = tpu.matmul %84, %82, %cst_67 {dimension_numbers = #tpu.dot_dimension_numbers<[1], [0], [0], [1], [0, 0, 1, 1], [], []>} : vector<32x32xbf16>, vector<32x128xbf16>, vector<32x128xf32> -> vector<32x128xf32>
    %86 = arith.addf %80, %85 : vector<32x128xf32>
    %87 = vector.extract_strided_slice %8 {offsets = [2, 0], sizes = [1, 128], strides = [1, 1]} : vector<3x128xf32> to vector<1x128xf32>
    %88 = vector.broadcast %87 : vector<1x128xf32> to vector<32x128xf32>
    %89 = arith.addf %86, %88 : vector<32x128xf32>
    %cst_68 = arith.constant 0.000000e+00 : f32
    %90 = vector.broadcast %cst_68 : f32 to vector<32x128xf32>
    %91 = arith.subf %90, %89 : vector<32x128xf32>
    %92 = math.exp %91 : vector<32x128xf32>
    %cst_69 = arith.constant 1.000000e+00 : f32
    %93 = vector.broadcast %cst_69 : f32 to vector<32x128xf32>
    %94 = arith.addf %93, %92 : vector<32x128xf32>
    %95 = tpu.reciprocal %94 {approx = true} : vector<32x128xf32> -> vector<32x128xf32>
    %c0_70 = arith.constant 0 : index
    %c0_71 = arith.constant 0 : index
    %96 = vector.load %arg7[%c0_70, %c0_71] : memref<32x128xf32, #tpu.memory_space<vmem>>, vector<32x128xf32>
    tpu.vector_store %arg7[%c0_70, %c0_71], %95 {strides = array<i32>} : memref<32x128xf32, #tpu.memory_space<vmem>>, vector<32x128xf32>,
    return
  }
  func.func @transform_0(%arg0: i32) -> (i32, i32) {
    %c0_i32 = arith.constant 0 : i32
    %c0_i32_0 = arith.constant 0 : i32
    %c0_i32_1 = arith.constant 0 : i32
    return %c0_i32, %c0_i32_0 : i32, i32
  }
  func.func @transform_1(%arg0: i32) -> (i32, i32) {
    %c0_i32 = arith.constant 0 : i32
    %c0_i32_0 = arith.constant 0 : i32
    %c0_i32_1 = arith.constant 0 : i32
    return %c0_i32, %c0_i32_0 : i32, i32
  }
  func.func @transform_2(%arg0: i32) -> (i32, i32) {
    %c0_i32 = arith.constant 0 : i32
    %c0_i32_0 = arith.constant 0 : i32
    %c0_i32_1 = arith.constant 0 : i32
    return %c0_i32, %c0_i32_0 : i32, i32
  }
  func.func @transform_3(%arg0: i32) -> (i32, i32, i32) {
    %c0_i32 = arith.constant 0 : i32
    %c0_i32_0 = arith.constant 0 : i32
    %c0_i32_1 = arith.constant 0 : i32
    %c0_i32_2 = arith.constant 0 : i32
    return %c0_i32, %c0_i32_0, %c0_i32_1 : i32, i32, i32
  }
  func.func @transform_4(%arg0: i32) -> (i32, i32, i32, i32) {
    %c0_i32 = arith.constant 0 : i32
    %c0_i32_0 = arith.constant 0 : i32
    %c0_i32_1 = arith.constant 0 : i32
    %c0_i32_2 = arith.constant 0 : i32
    %c0_i32_3 = arith.constant 0 : i32
    return %c0_i32, %c0_i32_0, %c0_i32_1, %c0_i32_2 : i32, i32, i32, i32
  }
  func.func @transform_5(%arg0: i32) -> (i32, i32) {
    %c0_i32 = arith.constant 0 : i32
    %c0_i32_0 = arith.constant 0 : i32
    %c0_i32_1 = arith.constant 0 : i32
    return %c0_i32, %c0_i32_0 : i32, i32
  }
  func.func @transform_6(%arg0: i32) -> (i32, i32) {
    %c0_i32 = arith.constant 0 : i32
    %c0_i32_0 = arith.constant 0 : i32
    %c0_i32_1 = arith.constant 0 : i32
    return %c0_i32, %c0_i32_0 : i32, i32
  }
}

</mosaic_0001>

<bundles_post_ra>
// kernel: _lambda_.1
= control target key start
LH: loop header
LB: loop body
LE: loop exit
PB: predicated region body
PF: predicated region fallthrough
CT: control target
= control target key end

     0   :  { %11 = vsyncpa [#allocation3], 0  ;;  %s1725_s0 = inlined_call_operand.vmem [shape: bf16[8,128], index: 0, kind: input, shape index: {}]   ;;  %s1726_s1 = inlined_call_operand.hbm [shape: bf16[128,64], index: 1, kind: input, shape index: {}]   ;;  %s1727_s2 = inlined_call_operand.vmem [shape: f32[8,64], index: 2, kind: input, shape index: {}]   ;;  %s1728_s3 = inlined_call_operand.hbm [shape: bf16[3,128,384], index: 3, kind: input, shape index: {}]   ;;  %s1729_s4 = inlined_call_operand.hbm [shape: bf16[3,3,32,32], index: 4, kind: input, shape index: {}]   ;;  %s1730_s5 = inlined_call_operand.vmem [shape: f32[3,128], index: 5, kind: input, shape index: {}]   ;;  %s1731_s6 = inlined_call_operand.vmem [shape: f32[32,128], index: 6, kind: output, shape index: {}]  }
   0x1   :  { %12 = vsyncpa [#allocation5], 0  ;;  %s34_s23 = sshll.u32 %s1728_s3, 4  ;;  %s1630_s24 = smov [#allocation4]   ;;  %s35_s23 = int_to_ptr.hbm [resolvable:$true] %s34_s23 }
   0x2   :  { %s36_s25 = sshll.u32 %s1630_s24, 4  ;;  %s19_s28 = sshll.u32 %s1726_s1, 4  ;;  %s37_s25 = int_to_ptr.vmem [resolvable:$true] %s36_s25  ;;  %s20_s28 = int_to_ptr.hbm [resolvable:$true] %s19_s28 }
   0x3   :  { %s1631_s29 = smov 192   ;;  %s1632_s30 = smov 12  }
   0x4   :  { %42 = dma.hbm_to_vmem [thread:$0]  %s35_s23, 9216, %s37_s25, [#allocation5], %s1631_s29, %s1631_s29, %s1632_s30  }
   0x5   :  { %s1633_s7 = smov [#allocation2]   ;;  %s1634_s9 = smov 64  }
   0x6   :  { %s21_s8 = sshll.u32 %s1633_s7, 4  ;;  %s1635_s10 = smov 4   ;;  %s22_s8 = int_to_ptr.vmem [resolvable:$true] %s21_s8 }
   0x7   :  { %27 = dma.hbm_to_vmem [thread:$0]  %s20_s28, 1024, %s22_s8, [#allocation3], %s1634_s9, %s1634_s9, %s1635_s10  }
   0x8   :  { %s47_s12 = sshll.u32 %s1729_s4, 4  ;;  %s1636_s13 = smov [#allocation6]   ;;  %s48_s12 = int_to_ptr.hbm [resolvable:$true] %s47_s12 }
   0x9   :  { %s49_s14 = sshll.u32 %s1636_s13, 4  ;;  %s50_s14 = int_to_ptr.vmem [resolvable:$true] %s49_s14 }
   0xa   :  { %55 = dma.hbm_to_vmem [thread:$0]  %s48_s12, 2304, %s50_s14, [#allocation5], %s1634_s9, %s1634_s9, %s1635_s10  }
   0xb   :  { %1626 = dma.done.wait [#allocation3], 1024  }
   0xc   :  { %1627 = vsyncadd [#allocation3], 4294966272 }
   0xd   :  { %1628 = dma.done.wait [#allocation5], 11520  }
   0xe   :  { %1629 = vsyncadd [#allocation5], 4294955776  ;;  %v1455_v0 = vld [vmem:[#allocation2 + $0x38] sm:$0xff]  ;;  %v1454_v1 = vld [vmem:[#allocation2 + $0x30] sm:$0xff]  ;;  %vm233_vm0 = vcmask 523264   ;;  %vm292_vm1 = vcmask 1043456  }
   0xf   :  { %137 = vmatpush.bf16.msra.mxu0 %v1455_v0  ;;  %v1168_v2 = vld [vmem:[#allocation4 + $0x48] sm:$0xf]  ;;  %v1466_v3 = vld [vmem:[#allocation4 + $0x50] sm:$0xf0]  ;;  %v1465_v4 = vld [vmem:[#allocation4 + $0x4c] sm:$0xf] }
  0x10   :  { %v1453_v5 = vld [vmem:[#allocation2 + $0x28] sm:$0xff]  ;;  %v1169_v6 = vor.u32 %v1466_v3, %v1168_v2  ;;  %v1170_v7 = vld [vmem:[#allocation4 + $0x54] sm:$0xf0]  ;;  %v1176_v8 = vld [vmem:[#allocation4 + $0x50] sm:$0xf]  ;;  %vm288_vm2 = vcmask 64512  }
  0x11   :  { %v1467_v9 = vld [vmem:[#allocation4 + $0x58] sm:$0xf0]  ;;  %v1173_v10 = vor.u32 %v1465_v4, %v1170_v7  ;;  %v1156_v12 = vld [vmem:[#allocation4 + $0x30] sm:$0xf]  ;;  %v1462_v14 = vld [vmem:[#allocation4 + $0x34] sm:$0xf] }
  0x12   :  { %v1177_v11 = vor.u32 %v1467_v9, %v1176_v8  ;;  %v1463_v13 = vld [vmem:[#allocation4 + $0x38] sm:$0xf0]  ;;  %241 = vmatpush.bf16.msra.mxu1 %v1169_v6  ;;  %v1158_v16 = vld [vmem:[#allocation4 + $0x3c] sm:$0xf0]  ;;  %v1164_v17 = vld [vmem:[#allocation4 + $0x38] sm:$0xf] }
  0x13   :  { %138 = vmatpush.bf16.msra.mxu0 %v1454_v1  ;;  %v1157_v15 = vor.u32 %v1463_v13, %v1156_v12  ;;  %v1464_v18 = vld [vmem:[#allocation4 + $0x40] sm:$0xf0]  ;;  %254 = vmatpush.bf16.msra.mxu2 %v1173_v10  ;;  %v1161_v19 = vor.u32 %v1462_v14, %v1158_v16  ;;  %v1451_v22 = vld [vmem:[#allocation2 + $0x18] sm:$0xff]  ;;  %v1450_v23 = vld [vmem:[#allocation2 + $0x10] sm:$0xff]  ;;  %vm597_vm3 = vcmask 130048   ;;  %vm956_vm4 = vcmask 261120  }
  0x14   :  { %267 = vmatpush.bf16.msra.mxu3 %v1177_v11  ;;  %v1165_v20 = vor.u32 %v1464_v18, %v1164_v17  ;;  %v1452_v21 = vld [vmem:[#allocation2 + $0x20] sm:$0xff]  ;;  %v1449_v24 = vld [vmem:[#allocation2 + $0x8] sm:$0xff]  ;;  %v1144_v27 = vld [vmem:[#allocation4 + $0x18] sm:$0xf] }
  0x15   :  { %v1448_v25 = vld [vmem:[#allocation2] sm:$0xff]  ;;  %v1459_v29 = vld [vmem:[#allocation4 + $0x1c] sm:$0xf]  ;;  %v1146_v31 = vld [vmem:[#allocation4 + $0x24] sm:$0xf0] }
  0x16   :  { %242 = vmatpush.bf16.msra.mxu1 %v1157_v15  ;;  %v71_v26 = vld [vmem:[%s1725_s0] sm:$0xf]  ;;  %v1460_v28 = vld [vmem:[#allocation4 + $0x20] sm:$0xf0]  ;;  %v1461_v33 = vld [vmem:[#allocation4 + $0x28] sm:$0xf0]  ;;  %v1149_v34 = vor.u32 %v1459_v29, %v1146_v31 }
  0x17   :  { %139 = vmatpush.bf16.msra.mxu0 %v1453_v5  ;;  %255 = vmatpush.bf16.msra.mxu2 %v1161_v19  ;;  %v1145_v30 = vor.u32 %v1460_v28, %v1144_v27  ;;  %v1152_v32 = vld [vmem:[#allocation4 + $0x20] sm:$0xf]  ;;  %v1457_v37 = vld [vmem:[#allocation4 + $0x8] sm:$0xf0]  ;;  %v1456_v38 = vld [vmem:[#allocation4 + $0x4] sm:$0xf] }
  0x18   :  { %268 = vmatpush.bf16.msra.mxu3 %v1165_v20  ;;  %v1153_v35 = vor.u32 %v1461_v33, %v1152_v32  ;;  %v1132_v36 = vld [vmem:[#allocation4] sm:$0xf]  ;;  %v1134_v40 = vld [vmem:[#allocation4 + $0xc] sm:$0xf0]  ;;  %v1140_v41 = vld [vmem:[#allocation4 + $0x8] sm:$0xf] }
  0x19   :  { %v1133_v39 = vor.u32 %v1457_v37, %v1132_v36  ;;  %v1458_v42 = vld [vmem:[#allocation4 + $0x10] sm:$0xf0]  ;;  %v1137_v43 = vor.u32 %v1456_v38, %v1134_v40  ;;  %v88_v45 = vld [vmem:[%s1727_s2] sm:$0xff]  ;;  %v1282_v51 = vld [vmem:[#allocation4 + $0x168] sm:$0xf] }
  0x1a   :  { %243 = vmatpush.bf16.msra.mxu1 %v1145_v30  ;;  %v1141_v44 = vor.u32 %v1458_v42, %v1140_v41  ;;  %v1493_v52 = vld [vmem:[#allocation4 + $0x170] sm:$0xf0]  ;;  %v1270_v54 = vld [vmem:[#allocation4 + $0x150] sm:$0xf]  ;;  %v1490_v55 = vld [vmem:[#allocation4 + $0x158] sm:$0xf0] }
  0x1b   :  { %140 = vmatpush.bf16.msra.mxu0 %v1452_v21  ;;  %256 = vmatpush.bf16.msra.mxu2 %v1149_v34  ;;  %v1283_v53 = vor.u32 %v1493_v52, %v1282_v51  ;;  %v1271_v56 = vor.u32 %v1490_v55, %v1270_v54  ;;  %v1290_v57 = vld [vmem:[#allocation4 + $0x170] sm:$0xf]  ;;  %v1494_v58 = vld [vmem:[#allocation4 + $0x178] sm:$0xf0]  ;;  %v1278_v62 = vld [vmem:[#allocation4 + $0x158] sm:$0xf] }
  0x1c   :  { %269 = vmatpush.bf16.msra.mxu3 %v1153_v35  ;;  %v1291_v61 = vor.u32 %v1494_v58, %v1290_v57  ;;  %v1491_v63 = vld [vmem:[#allocation4 + $0x160] sm:$0xf0]  ;;  %v1492_v2 = vld [vmem:[#allocation4 + $0x16c] sm:$0xf]  ;;  %v1284_v3 = vld [vmem:[#allocation4 + $0x174] sm:$0xf0] }
  0x1d   :  { %v1468_v1 = vld [vmem:[#allocation6] sm:$0xff]  ;;  %v1279_v4 = vor.u32 %v1491_v63, %v1278_v62  ;;  %v1287_v8 = vor.u32 %v1492_v2, %v1284_v3  ;;  %v1489_v11 = vld [vmem:[#allocation4 + $0x154] sm:$0xf]  ;;  %v1258_v20 = vld [vmem:[#allocation4 + $0x138] sm:$0xf] }
  0x1e   :  { %244 = vmatpush.bf16.msra.mxu1 %v1133_v39  ;;  %v1272_v12 = vld [vmem:[#allocation4 + $0x15c] sm:$0xf0]  ;;  %v1469_v14 = vld [vmem:[#allocation6 + $0x10] sm:$0xff]  ;;  %v1487_v21 = vld [vmem:[#allocation4 + $0x140] sm:$0xf0] }
  0x1f   :  { %141 = vmatpush.bf16.msra.mxu0 %v1451_v22  ;;  %257 = vmatpush.bf16.msra.mxu2 %v1137_v43  ;;  %v1470_v16 = vld [vmem:[#allocation6 + $0x20] sm:$0xff]  ;;  %v1275_v17 = vor.u32 %v1489_v11, %v1272_v12  ;;  %v1486_v22 = vld [vmem:[#allocation4 + $0x13c] sm:$0xf]  ;;  %v1484_v30 = vld [vmem:[#allocation4 + $0x128] sm:$0xf0] }
  0x20   :  { %270 = vmatpush.bf16.msra.mxu3 %v1141_v44  ;;  %v1246_v29 = vld [vmem:[#allocation4 + $0x120] sm:$0xf]  ;;  %v1483_v31 = vld [vmem:[#allocation4 + $0x124] sm:$0xf]  ;;  %v1248_v33 = vld [vmem:[#allocation4 + $0x12c] sm:$0xf0] }
  0x21   :  { %v1247_v32 = vor.u32 %v1484_v30, %v1246_v29  ;;  %v1254_v34 = vld [vmem:[#allocation4 + $0x128] sm:$0xf]  ;;  %v1485_v35 = vld [vmem:[#allocation4 + $0x130] sm:$0xf0]  ;;  %v1251_v36 = vor.u32 %v1483_v31, %v1248_v33  ;;  %v1480_v40 = vld [vmem:[#allocation4 + $0x10c] sm:$0xf] }
  0x22   :  { %v1255_v37 = vor.u32 %v1485_v35, %v1254_v34  ;;  %v1234_v38 = vld [vmem:[#allocation4 + $0x108] sm:$0xf]  ;;  %v1481_v39 = vld [vmem:[#allocation4 + $0x110] sm:$0xf0]  ;;  %v1236_v42 = vld [vmem:[#allocation4 + $0x114] sm:$0xf0] }
  0x23   :  { %142 = vmatpush.bf16.msra.mxu0 %v1450_v23  ;;  %v1259_v23 = vor.u32 %v1487_v21, %v1258_v20  ;;  %v1235_v41 = vor.u32 %v1481_v39, %v1234_v38  ;;  %v1242_v43 = vld [vmem:[#allocation4 + $0x110] sm:$0xf]  ;;  %v1482_v44 = vld [vmem:[#allocation4 + $0x118] sm:$0xf0]  ;;  %v1224_v51 = vld [vmem:[#allocation4 + $0xfc] sm:$0xf0] }
  0x24   :  { %v1230_v52 = vld [vmem:[#allocation4 + $0xf8] sm:$0xf]  ;;  %v1475_v57 = vld [vmem:[#allocation4 + $0xe0] sm:$0xf0]  ;;  %v1474_v58 = vld [vmem:[#allocation4 + $0xdc] sm:$0xf] }
  0x25   :  { %v1476_v62 = vld [vmem:[#allocation4 + $0xe8] sm:$0xf0]  ;;  %v1471_v3 = vld [vmem:[#allocation4 + $0xc4] sm:$0xf]  ;;  %v1408_v29 = vld [vmem:[#allocation4 + $0x228] sm:$0xf] }
  0x26   :  { %v1472_v2 = vld [vmem:[#allocation4 + $0xc8] sm:$0xf0]  ;;  %v1523_v30 = vld [vmem:[#allocation4 + $0x230] sm:$0xf0]  ;;  %v1416_v33 = vld [vmem:[#allocation4 + $0x230] sm:$0xf] }
  0x27   :  { %143 = vmatpush.bf16.msra.mxu0 %v1449_v24  ;;  %v1260_v24 = vld [vmem:[#allocation4 + $0x144] sm:$0xf0]  ;;  %v1522_v31 = vld [vmem:[#allocation4 + $0x22c] sm:$0xf]  ;;  %v1524_v34 = vld [vmem:[#allocation4 + $0x238] sm:$0xf0] }
  0x28   :  { %v1263_v27 = vor.u32 %v1486_v22, %v1260_v24 }
  0x2b   :  { %144 = vmatpush.bf16.msra.mxu0 %v1448_v25  ;;  %v1266_v25 = vld [vmem:[#allocation4 + $0x140] sm:$0xf] }
  0x2e   :  { %145 = vmatmul.bf16.vlgmr.msra.gmra.mxu0 %v71_v26  ;;  %v1488_v26 = vld [vmem:[#allocation4 + $0x148] sm:$0xf0] }
  0x2f   :  { %533 = vmatpush.bf16.msrb.mxu0 %v1283_v53  ;;  %v1267_v28 = vor.u32 %v1488_v26, %v1266_v25  ;;  %v1479_v53 = vld [vmem:[#allocation4 + $0x100] sm:$0xf0] }
  0x30   :  { %v1231_v55 = vor.u32 %v1479_v53, %v1230_v52 }
  0x33   :  { %534 = vmatpush.bf16.msrb.mxu0 %v1271_v56  ;;  %v1210_v56 = vld [vmem:[#allocation4 + $0xd8] sm:$0xf] }
  0x37   :  { %535 = vmatpush.bf16.msrb.mxu0 %v1259_v23 }
  0x3b   :  { %536 = vmatpush.bf16.msrb.mxu0 %v1247_v32  ;;  %v1410_v32 = vld [vmem:[#allocation4 + $0x234] sm:$0xf0] }
  0x3f   :  { %537 = vmatpush.bf16.msrb.mxu0 %v1235_v41  ;;  %v1417_v41 = vor.u32 %v1524_v34, %v1416_v33  ;;  %v1336_v33 = vld [vmem:[#allocation4 + $0x198] sm:$0xf]  ;;  %v1505_v34 = vld [vmem:[#allocation4 + $0x1a0] sm:$0xf0] }
  0xab   :  { %v146_v46 = vpop.f32.mrf.mxu0 }
  0xac   :  { %v147_v47 = vadd.f32 %v146_v46, %v88_v45  ;;  %v1239_v45 = vor.u32 %v1480_v40, %v1236_v42  ;;  %v1243_v46 = vor.u32 %v1482_v44, %v1242_v43  ;;  %v1409_v40 = vor.u32 %v1523_v30, %v1408_v29  ;;  %v1396_v42 = vld [vmem:[#allocation4 + $0x210] sm:$0xf]  ;;  %v1398_v43 = vld [vmem:[#allocation4 + $0x21c] sm:$0xf0]  ;;  %v1356_v29 = vld [vmem:[#allocation4 + $0x1b8] sm:$0xf] }
  0xad   :  { %v1509_v30 = vld [vmem:[#allocation4 + $0x1c0] sm:$0xf0] }
  0xae   :  { %v150_v48 = vmax.f32 %v147_v47, 0.0  ;;  %v1222_v47 = vld [vmem:[#allocation4 + $0xf0] sm:$0xf] }
  0xb0   :  { %v151_v49 = vpack.c.bf16 %v150_v48, %v150_v48  ;;  %v1478_v48 = vld [vmem:[#allocation4 + $0xf8] sm:$0xf0] }
  0xb2   :  { %1178 = vmatmul.msk.bf16.vlgmr.msra.gmra.mxu1 %vm233_vm0, %v151_v49  ;;  %1179 = vmatmul.msk.bf16.vlgmr.msra.gmra.mxu2 %vm233_vm0, %v151_v49 }
  0xb3   :  { %1180 = vmatmul.msk.bf16.vlgmr.msra.gmra.mxu3 %vm233_vm0, %v151_v49  ;;  %v148_v50 = vpop.f32.mrf.mxu0  ;;  %v1477_v49 = vld [vmem:[#allocation4 + $0xf4] sm:$0xf] }
  0xb4   :  { %v1223_v50 = vor.u32 %v1478_v48, %v1222_v47  ;;  %v1227_v54 = vor.u32 %v1477_v49, %v1224_v51  ;;  %v1404_v48 = vld [vmem:[#allocation4 + $0x218] sm:$0xf]  ;;  %v1521_v49 = vld [vmem:[#allocation4 + $0x220] sm:$0xf0]  ;;  %v1495_v51 = vld [vmem:[#allocation6 + $0x30] sm:$0xff] }
  0xb5   :  { %v1405_v53 = vor.u32 %v1521_v49, %v1404_v48  ;;  %v1503_v48 = vld [vmem:[#allocation4 + $0x190] sm:$0xf0] }
  0xb6   :  { %538 = vmatpush.bf16.msrb.mxu0 %v1223_v50  ;;  %v1497_v50 = vld [vmem:[#allocation6 + $0x40] sm:$0xff] }
 0x12f   :  { %v246_v59 = vpop.f32.mrf.mxu1 }
 0x130   :  { %v276_v60 = vpack.c.bf16 %v246_v59, %v246_v59  ;;  %v1211_v59 = vor.u32 %v1475_v57, %v1210_v56  ;;  %v1499_v56 = vld [vmem:[#allocation6 + $0x50] sm:$0xff]  ;;  %v1498_v57 = vld [vmem:[#allocation6 + $0x48] sm:$0xff] }
 0x132   :  { %v319_v0 = vsel %vm292_vm1, %v276_v60, 0  ;;  %v1212_v60 = vld [vmem:[#allocation4 + $0xe4] sm:$0xf0]  ;;  %539 = vmatpush.bf16.msrb.mxu0 %v1211_v59  ;;  %v1500_v59 = vld [vmem:[#allocation6 + $0x58] sm:$0xff] }
 0x133   :  { %328 = vmatpush.bf16.msrb.mxu2 %v319_v0  ;;  %v1215_v63 = vor.u32 %v1474_v58, %v1212_v60  ;;  %v1496_v58 = vld [vmem:[#allocation6 + $0x38] sm:$0xff] }
 0x134   :  { %v1384_v60 = vld [vmem:[#allocation4 + $0x1f8] sm:$0xf] }
 0x135   :  { %v259_v5 = vpop.f32.mrf.mxu2 }
 0x136   :  { %v279_v6 = vpack.c.bf16 %v259_v5, %v259_v5  ;;  %v272_v7 = vpop.f32.mrf.mxu3  ;;  %1190 = vmatmul.msk.bf16.vlgmr.msrb.gmra.mxu2 %vm288_vm2, %v1468_v1  ;;  %v1198_v1 = vld [vmem:[#allocation4 + $0xc0] sm:$0xf]  ;;  %v1200_v5 = vld [vmem:[#allocation4 + $0xcc] sm:$0xf0] }
 0x137   :  { %561 = vmatpush.bf16.msra.mxu2 %v1291_v61  ;;  %v335_v9 = vpack.c.bf16 %v272_v7, %v272_v7  ;;  %v248_v10 = vpop.f32.mrf.mxu1  ;;  %v1218_v61 = vld [vmem:[#allocation4 + $0xe0] sm:$0xf]  ;;  %v1473_v7 = vld [vmem:[#allocation4 + $0xd0] sm:$0xf0] }
 0x138   :  { %v294_v13 = vsel %vm292_vm1, %v279_v6, 0  ;;  %v1219_v0 = vor.u32 %v1476_v62, %v1218_v61  ;;  %v1206_v6 = vld [vmem:[#allocation4 + $0xc8] sm:$0xf]  ;;  %v1517_v61 = vld [vmem:[#allocation4 + $0x200] sm:$0xf0] }
 0x139   :  { %303 = vmatpush.bf16.msrb.mxu1 %v294_v13  ;;  %v348_v15 = vsel %vm292_vm1, %v335_v9, 0  ;;  %v1207_v9 = vor.u32 %v1473_v7, %v1206_v6  ;;  %v1516_v62 = vld [vmem:[#allocation4 + $0x1fc] sm:$0xf]  ;;  %v1514_v6 = vld [vmem:[#allocation4 + $0x1e8] sm:$0xf0] }
 0x13a   :  { %357 = vmatpush.bf16.msrb.mxu3 %v348_v15  ;;  %v1513_v7 = vld [vmem:[#allocation4 + $0x1e4] sm:$0xf] }
 0x13b   :  { %562 = vmatpush.bf16.msra.mxu2 %v1279_v4  ;;  %v1199_v4 = vor.u32 %v1472_v2, %v1198_v1  ;;  %v1392_v1 = vld [vmem:[#allocation4 + $0x200] sm:$0xf]  ;;  %v1518_v2 = vld [vmem:[#allocation4 + $0x208] sm:$0xf0] }
 0x13c   :  { %1185 = vmatmul.msk.bf16.vlgmr.msrb.gmra.mxu1 %vm288_vm2, %v1469_v14  ;;  %v1696_v14 = vld [vmem:[%s1730_s5] sm:$0x7] }
 0x13d   :  { %547 = vmatpush.bf16.msra.mxu1 %v1287_v8  ;;  %1195 = vmatmul.msk.bf16.vlgmr.msrb.gmra.mxu3 %vm288_vm2, %v1470_v16  ;;  %v261_v18 = vpop.f32.mrf.mxu2  ;;  %v1203_v8 = vor.u32 %v1471_v3, %v1200_v5  ;;  %v1372_v5 = vld [vmem:[#allocation4 + $0x1e0] sm:$0xf] }
 0x13e   :  { %v274_v19 = vpop.f32.mrf.mxu3  ;;  %540 = vmatpush.bf16.msrb.mxu0 %v1199_v4  ;;  %v366_v18 = vperm.slane %v1696_v14, 0  ;;  %v1393_v4 = vor.u32 %v1518_v2, %v1392_v1 }
 0x13f   :  { %563 = vmatpush.bf16.msra.mxu2 %v1267_v28 }
 0x141   :  { %548 = vmatpush.bf16.msra.mxu1 %v1275_v17 }
 0x143   :  { %564 = vmatpush.bf16.msra.mxu2 %v1255_v37  ;;  %v1519_v37 = vld [vmem:[#allocation4 + $0x214] sm:$0xf] }
 0x144   :  { %v1401_v47 = vor.u32 %v1519_v37, %v1398_v43  ;;  %v1338_v37 = vld [vmem:[#allocation4 + $0x1a4] sm:$0xf0]  ;;  %v1502_v43 = vld [vmem:[#allocation4 + $0x188] sm:$0xf0] }
 0x145   :  { %549 = vmatpush.bf16.msra.mxu1 %v1263_v27 }
 0x147   :  { %565 = vmatpush.bf16.msra.mxu2 %v1243_v46  ;;  %v1520_v46 = vld [vmem:[#allocation4 + $0x218] sm:$0xf0] }
 0x148   :  { %v1397_v52 = vor.u32 %v1520_v46, %v1396_v42  ;;  %v1324_v42 = vld [vmem:[#allocation4 + $0x180] sm:$0xf]  ;;  %v1326_v46 = vld [vmem:[#allocation4 + $0x18c] sm:$0xf0] }
 0x149   :  { %550 = vmatpush.bf16.msra.mxu1 %v1251_v36  ;;  %v1413_v36 = vor.u32 %v1522_v31, %v1410_v32  ;;  %v1357_v32 = vor.u32 %v1509_v30, %v1356_v29 }
 0x14b   :  { %566 = vmatpush.bf16.msra.mxu2 %v1231_v55 }
 0x14d   :  { %551 = vmatpush.bf16.msra.mxu1 %v1239_v45 }
 0x14f   :  { %567 = vmatpush.bf16.msra.mxu2 %v1219_v0  ;;  %v1386_v0 = vld [vmem:[#allocation4 + $0x204] sm:$0xf0] }
 0x150   :  { %v1389_v3 = vor.u32 %v1516_v62, %v1386_v0 }
 0x151   :  { %552 = vmatpush.bf16.msra.mxu1 %v1227_v54 }
 0x153   :  { %568 = vmatpush.bf16.msra.mxu2 %v1207_v9  ;;  %v1374_v9 = vld [vmem:[#allocation4 + $0x1ec] sm:$0xf0] }
 0x155   :  { %553 = vmatpush.bf16.msra.mxu1 %v1215_v63  ;;  %v1385_v63 = vor.u32 %v1517_v61, %v1384_v60 }
 0x157   :  { %894 = vmatpush.bf16.msrb.mxu2 %v1413_v36  ;;  %v1337_v36 = vor.u32 %v1505_v34, %v1336_v33 }
 0x159   :  { %554 = vmatpush.bf16.msra.mxu1 %v1203_v8  ;;  %v1373_v8 = vor.u32 %v1514_v6, %v1372_v5 }
 0x15b   :  { %895 = vmatpush.bf16.msrb.mxu2 %v1401_v47  ;;  %v1332_v47 = vld [vmem:[#allocation4 + $0x188] sm:$0xf] }
 0x15f   :  { %896 = vmatpush.bf16.msrb.mxu2 %v1389_v3 }
 0x1b9   :  { %v305_v10 = vpop.f32.mrf.mxu1  ;;  %v330_v11 = vpop.f32.mrf.mxu2 }
 0x1ba   :  { %v331_v13 = vadd.f32 %v330_v11, %v305_v10  ;;  %v1380_v10 = vld [vmem:[#allocation4 + $0x1e8] sm:$0xf]  ;;  %v1515_v11 = vld [vmem:[#allocation4 + $0x1f0] sm:$0xf0] }
 0x1c0   :  { %v359_v12 = vpop.f32.mrf.mxu3 }
 0x1c1   :  { %v307_v15 = vpop.f32.mrf.mxu1  ;;  %v332_v16 = vpop.f32.mrf.mxu2  ;;  %v364_v17 = vadd.f32 %v359_v12, %v331_v13  ;;  %v1377_v12 = vor.u32 %v1513_v7, %v1374_v9  ;;  %v1381_v13 = vor.u32 %v1515_v11, %v1380_v10 }
 0x1c2   :  { %v333_v19 = vadd.f32 %v332_v16, %v307_v15  ;;  %v1360_v15 = vld [vmem:[#allocation4 + $0x1c8] sm:$0xf]  ;;  %v1511_v16 = vld [vmem:[#allocation4 + $0x1d0] sm:$0xf0] }
 0x1c3   :  { %v367_v21 = vadd.f32 %v366_v18, %v364_v17  ;;  %897 = vmatpush.bf16.msrb.mxu2 %v1377_v12  ;;  %v1510_v17 = vld [vmem:[#allocation4 + $0x1cc] sm:$0xf] }
 0x1c5   :  { %v369_v24 = vmax.f32 %v367_v21, 0.0  ;;  %v1512_v21 = vld [vmem:[#allocation4 + $0x1d8] sm:$0xf0] }
 0x1c8   :  { %v361_v20 = vpop.f32.mrf.mxu3 }
 0x1c9   :  { %v365_v22 = vadd.f32 %v361_v20, %v333_v19  ;;  %v1362_v19 = vld [vmem:[#allocation4 + $0x1d4] sm:$0xf0]  ;;  %v1368_v20 = vld [vmem:[#allocation4 + $0x1d0] sm:$0xf] }
 0x1cb   :  { %v368_v23 = vadd.f32 %v366_v18, %v365_v22  ;;  %v1361_v18 = vor.u32 %v1511_v16, %v1360_v15  ;;  %v1365_v22 = vor.u32 %v1510_v17, %v1362_v19 }
 0x1cd   :  { %v370_v25 = vmax.f32 %v368_v23, 0.0  ;;  %v1369_v23 = vor.u32 %v1512_v21, %v1368_v20  ;;  %898 = vmatpush.bf16.msrb.mxu2 %v1365_v22 }
 0x1cf   :  { %v371_v26 = vpack.c.bf16 %v370_v25, %v369_v24  ;;  %v1348_v24 = vld [vmem:[#allocation4 + $0x1b0] sm:$0xf]  ;;  %v1508_v25 = vld [vmem:[#allocation4 + $0x1b8] sm:$0xf0] }
 0x1d1   :  { %541 = vmatmul.bf16.vlgmr.msrb.gmra.mxu0 %v371_v26  ;;  %555 = vmatmul.bf16.vlgmr.msra.gmra.mxu1 %v371_v26 }
 0x1d2   :  { %569 = vmatmul.bf16.vlgmr.msra.gmra.mxu2 %v371_v26  ;;  %v1507_v26 = vld [vmem:[#allocation4 + $0x1b4] sm:$0xf] }
 0x24e   :  { %v542_v27 = vpop.f32.mrf.mxu0  ;;  %v556_v28 = vpop.f32.mrf.mxu1 }
 0x255   :  { %v570_v35 = vpop.f32.mrf.mxu2 }
 0x256   :  { %v544_v38 = vpop.f32.mrf.mxu0  ;;  %v558_v39 = vpop.f32.mrf.mxu1 }
 0x257   :  { %v575_v44 = vpack.c.bf16 %v544_v38, %v542_v27  ;;  %v581_v45 = vpack.c.bf16 %v558_v39, %v556_v28  ;;  %v1349_v27 = vor.u32 %v1508_v25, %v1348_v24  ;;  %v1350_v28 = vld [vmem:[#allocation4 + $0x1bc] sm:$0xf0]  ;;  %v1506_v39 = vld [vmem:[#allocation4 + $0x1a8] sm:$0xf0] }
 0x258   :  { %v1353_v31 = vor.u32 %v1507_v26, %v1350_v28  ;;  %v1344_v38 = vld [vmem:[#allocation4 + $0x1a0] sm:$0xf] }
 0x259   :  { %611 = vmatpush.bf16.msra.mxu3 %v581_v45  ;;  %646 = vmatpush.bf16.msra.mxu0 %v575_v44  ;;  %v1501_v44 = vld [vmem:[#allocation4 + $0x184] sm:$0xf]  ;;  %v1325_v45 = vor.u32 %v1502_v43, %v1324_v42  ;;  %v1528_v42 = vld [vmem:[#allocation6 + $0x78] sm:$0xff] }
 0x25a   :  { %899 = vmatpush.bf16.msrb.mxu2 %v1353_v31  ;;  %v1329_v49 = vor.u32 %v1501_v44, %v1326_v46  ;;  %v1063_v46 = vperm.slane %v1696_v14, 2 }
 0x25c   :  { %1300 = vmatmul.msk.bf16.vlgmr.msra.gmra.mxu3 %vm597_vm3, %v1497_v50  ;;  %1310 = vmatmul.msk.bf16.vlgmr.msra.gmra.mxu0 %vm597_vm3, %v1495_v51  ;;  %v1333_v50 = vor.u32 %v1503_v48, %v1332_v47 }
 0x25d   :  { %875 = vmatpush.bf16.msrb.mxu3 %v1409_v40  ;;  %913 = vmatpush.bf16.msrb.mxu0 %v1417_v41  ;;  %v572_v54 = vpop.f32.mrf.mxu2  ;;  %v1345_v41 = vor.u32 %v1506_v39, %v1344_v38  ;;  %v1525_v38 = vld [vmem:[#allocation6 + $0x60] sm:$0xff]  ;;  %v1527_v39 = vld [vmem:[#allocation6 + $0x70] sm:$0xff] }
 0x25e   :  { %v658_v55 = vpack.c.bf16 %v572_v54, %v570_v35  ;;  %v1504_v35 = vld [vmem:[#allocation4 + $0x19c] sm:$0xf] }
 0x25f   :  { %v1341_v40 = vor.u32 %v1504_v35, %v1338_v37  ;;  %v1529_v35 = vld [vmem:[#allocation6 + $0x80] sm:$0xff] }
 0x260   :  { %687 = vmatpush.bf16.msrb.mxu1 %v658_v55 }
 0x261   :  { %876 = vmatpush.bf16.msrb.mxu3 %v1397_v52  ;;  %914 = vmatpush.bf16.msrb.mxu0 %v1405_v53 }
 0x262   :  { %900 = vmatpush.bf16.msrb.mxu2 %v1341_v40  ;;  %v1530_v40 = vld [vmem:[#allocation6 + $0x88] sm:$0xff] }
 0x263   :  { %1320 = vmatmul.msk.bf16.vlgmr.msrb.gmra.mxu1 %vm597_vm3, %v1499_v56  ;;  %v703_v56 = vperm.slane %v1696_v14, 1 }
 0x265   :  { %877 = vmatpush.bf16.msrb.mxu3 %v1385_v63  ;;  %915 = vmatpush.bf16.msrb.mxu0 %v1393_v4 }
 0x266   :  { %901 = vmatpush.bf16.msrb.mxu2 %v1329_v49 }
 0x269   :  { %878 = vmatpush.bf16.msrb.mxu3 %v1373_v8  ;;  %916 = vmatpush.bf16.msrb.mxu0 %v1381_v13 }
 0x26c   :  { %1301 = vmatmul.msk.bf16.gmra.mxu3 %vm597_vm3, %v1498_v57  ;;  %1311 = vmatmul.msk.bf16.gmra.mxu0 %vm597_vm3, %v1496_v58 }
 0x26d   :  { %879 = vmatpush.bf16.msrb.mxu3 %v1361_v18  ;;  %917 = vmatpush.bf16.msrb.mxu0 %v1369_v23 }
 0x271   :  { %880 = vmatpush.bf16.msrb.mxu3 %v1349_v27  ;;  %918 = vmatpush.bf16.msrb.mxu0 %v1357_v32 }
 0x273   :  { %1321 = vmatmul.msk.bf16.gmra.mxu1 %vm597_vm3, %v1500_v59 }
 0x275   :  { %881 = vmatpush.bf16.msrb.mxu3 %v1337_v36  ;;  %919 = vmatpush.bf16.msrb.mxu0 %v1345_v41  ;;  %v1526_v41 = vld [vmem:[#allocation6 + $0x68] sm:$0xff] }
 0x279   :  { %882 = vmatpush.bf16.msrb.mxu3 %v1325_v45  ;;  %920 = vmatpush.bf16.msrb.mxu0 %v1333_v50 }
 0x2d9   :  { %v648_v51 = vpop.f32.mrf.mxu0 }
 0x2df   :  { %v613_v52 = vpop.f32.mrf.mxu3 }
 0x2e0   :  { %v689_v53 = vpop.f32.mrf.mxu1  ;;  %v649_v54 = vadd.f32 %v648_v51, %v613_v52 }
 0x2e1   :  { %v650_v55 = vpop.f32.mrf.mxu0 }
 0x2e2   :  { %v699_v57 = vadd.f32 %v689_v53, %v649_v54 }
 0x2e4   :  { %v704_v61 = vadd.f32 %v703_v56, %v699_v57 }
 0x2e6   :  { %v708_v1 = vmax.f32 %v704_v61, 0.0 }
 0x2e7   :  { %v615_v58 = vpop.f32.mrf.mxu3 }
 0x2e8   :  { %v651_v59 = vadd.f32 %v650_v55, %v615_v58  ;;  %v691_v60 = vpop.f32.mrf.mxu1 }
 0x2e9   :  { %v653_v0 = vpop.f32.mrf.mxu0 }
 0x2ea   :  { %v700_v62 = vadd.f32 %v691_v60, %v651_v59 }
 0x2ec   :  { %v705_v63 = vadd.f32 %v703_v56, %v700_v62 }
 0x2ee   :  { %v709_v2 = vmax.f32 %v705_v63, 0.0 }
 0x2ef   :  { %v618_v3 = vpop.f32.mrf.mxu3 }
 0x2f0   :  { %v712_v4 = vpack.c.bf16 %v709_v2, %v708_v1  ;;  %v694_v5 = vpop.f32.mrf.mxu1  ;;  %v654_v6 = vadd.f32 %v653_v0, %v618_v3 }
 0x2f1   :  { %v655_v8 = vpop.f32.mrf.mxu0 }
 0x2f2   :  { %883 = vmatmul.bf16.vlgmr.msrb.gmra.mxu3 %v712_v4  ;;  %902 = vmatmul.bf16.vlgmr.msrb.gmra.mxu2 %v712_v4  ;;  %v701_v7 = vadd.f32 %v694_v5, %v654_v6 }
 0x2f3   :  { %921 = vmatmul.bf16.vlgmr.msrb.gmra.mxu0 %v712_v4 }
 0x2f4   :  { %v706_v12 = vadd.f32 %v703_v56, %v701_v7 }
 0x2f6   :  { %v710_v16 = vmax.f32 %v706_v12, 0.0 }
 0x2f7   :  { %v620_v9 = vpop.f32.mrf.mxu3 }
 0x2f8   :  { %v656_v10 = vadd.f32 %v655_v8, %v620_v9  ;;  %v696_v11 = vpop.f32.mrf.mxu1 }
 0x2fa   :  { %v702_v13 = vadd.f32 %v696_v11, %v656_v10 }
 0x2fc   :  { %v707_v15 = vadd.f32 %v703_v56, %v702_v13 }
 0x2fe   :  { %v711_v17 = vmax.f32 %v707_v15, 0.0 }
 0x300   :  { %v713_v18 = vpack.c.bf16 %v711_v17, %v710_v16 }
 0x302   :  { %888 = vmatmul.bf16.gmra.mxu3 %v713_v18  ;;  %907 = vmatmul.bf16.gmra.mxu2 %v713_v18 }
 0x303   :  { %926 = vmatmul.bf16.gmra.mxu0 %v713_v18 }
 0x370   :  { %v922_v19 = vpop.f32.mrf.mxu0 }
 0x375   :  { %v884_v20 = vpop.f32.mrf.mxu3  ;;  %v903_v21 = vpop.f32.mrf.mxu2 }
 0x378   :  { %v924_v22 = vpop.f32.mrf.mxu0 }
 0x379   :  { %v1017_v30 = vpack.c.bf16 %v924_v22, %v922_v19 }
 0x37d   :  { %v886_v23 = vpop.f32.mrf.mxu3  ;;  %v905_v24 = vpop.f32.mrf.mxu2 }
 0x37e   :  { %v932_v36 = vpack.c.bf16 %v886_v23, %v884_v20  ;;  %v939_v37 = vpack.c.bf16 %v905_v24, %v903_v21 }
 0x380   :  { %v927_v25 = vpop.f32.mrf.mxu0 }
 0x385   :  { %v889_v26 = vpop.f32.mrf.mxu3  ;;  %v908_v27 = vpop.f32.mrf.mxu2 }
 0x388   :  { %v929_v28 = vpop.f32.mrf.mxu0 }
 0x389   :  { %v1018_v29 = vpack.c.bf16 %v929_v28, %v927_v25 }
 0x38b   :  { %1046 = vmatpush.bf16.msra.mxu2 %v1018_v29 }
 0x38d   :  { %v891_v31 = vpop.f32.mrf.mxu3  ;;  %v910_v32 = vpop.f32.mrf.mxu2 }
 0x38e   :  { %v933_v33 = vpack.c.bf16 %v891_v31, %v889_v26  ;;  %v940_v34 = vpack.c.bf16 %v910_v32, %v908_v27 }
 0x38f   :  { %1047 = vmatpush.bf16.msra.mxu2 %v1017_v30 }
 0x390   :  { %969 = vmatpush.bf16.msra.mxu1 %v940_v34  ;;  %1004 = vmatpush.bf16.msra.mxu3 %v933_v33 }
 0x392   :  { %1446 = vmatmul.msk.bf16.vlgmr.msra.gmra.mxu2 %vm956_vm4, %v1529_v35 }
 0x394   :  { %970 = vmatpush.bf16.msra.mxu1 %v939_v37  ;;  %1005 = vmatpush.bf16.msra.mxu3 %v932_v36 }
 0x397   :  { %1436 = vmatmul.msk.bf16.vlgmr.msra.gmra.mxu3 %vm956_vm4, %v1525_v38  ;;  %1426 = vmatmul.msk.bf16.vlgmr.msra.gmra.mxu1 %vm956_vm4, %v1527_v39 }
 0x3a2   :  { %1447 = vmatmul.msk.bf16.gmra.mxu2 %vm956_vm4, %v1530_v40 }
 0x3a7   :  { %1437 = vmatmul.msk.bf16.gmra.mxu3 %vm956_vm4, %v1526_v41  ;;  %1427 = vmatmul.msk.bf16.gmra.mxu1 %vm956_vm4, %v1528_v42 }
 0x414   :  { %v972_v43 = vpop.f32.mrf.mxu1 }
 0x415   :  { %v1049_v44 = vpop.f32.mrf.mxu2 }
 0x41a   :  { %v1007_v45 = vpop.f32.mrf.mxu3 }
 0x41b   :  { %v1008_v47 = vadd.f32 %v1007_v45, %v972_v43 }
 0x41c   :  { %v974_v49 = vpop.f32.mrf.mxu1 }
 0x41d   :  { %v1059_v48 = vadd.f32 %v1049_v44, %v1008_v47  ;;  %v1051_v51 = vpop.f32.mrf.mxu2 }
 0x41f   :  { %v1064_v50 = vadd.f32 %v1063_v46, %v1059_v48 }
 0x421   :  { %v1068_v52 = vsub.f32 0.0, %v1064_v50 }
 0x422   :  { %v1009_v53 = vpop.f32.mrf.mxu3 }
 0x423   :  { %v1072_v54 = vmul.f32 1.442695, %v1068_v52  ;;  %v1010_v55 = vadd.f32 %v1009_v53, %v974_v49 }
 0x424   :  { %v977_v58 = vpop.f32.mrf.mxu1 }
 0x425   :  { %1538 = vpow2.f32 %v1072_v54  ;;  %v1060_v56 = vadd.f32 %v1051_v51, %v1010_v55  ;;  %v1054_v61 = vpop.f32.mrf.mxu2 }
 0x427   :  { %v1065_v57 = vadd.f32 %v1063_v46, %v1060_v56 }
 0x429   :  { %v1069_v59 = vsub.f32 0.0, %v1065_v57 }
 0x42a   :  { %v1012_v60 = vpop.f32.mrf.mxu3 }
 0x42b   :  { %v1539_v62 = vpop.eup %1538  ;;  %v1074_v63 = vmul.f32 1.442695, %v1069_v59  ;;  %v1013_v0 = vadd.f32 %v1012_v60, %v977_v58 }
 0x42c   :  { %v1080_v14 = vadd.f32 1.0, %v1539_v62  ;;  %v979_v4 = vpop.f32.mrf.mxu1 }
 0x42d   :  { %1540 = vpow2.f32 %v1074_v63  ;;  %v1061_v1 = vadd.f32 %v1054_v61, %v1013_v0  ;;  %v1056_v11 = vpop.f32.mrf.mxu2 }
 0x42e   :  { %1542 = vrcp.f32 %v1080_v14 }
 0x42f   :  { %v1066_v2 = vadd.f32 %v1063_v46, %v1061_v1 }
 0x431   :  { %v1070_v3 = vsub.f32 0.0, %v1066_v2 }
 0x432   :  { %v1014_v5 = vpop.f32.mrf.mxu3 }
 0x433   :  { %v1541_v6 = vpop.eup %1540  ;;  %v1076_v7 = vmul.f32 1.442695, %v1070_v3  ;;  %v1015_v8 = vadd.f32 %v1014_v5, %v979_v4 }
 0x434   :  { %v1543_v9 = vpop.eup %1542  ;;  %v1081_v10 = vadd.f32 1.0, %v1541_v6 }
 0x435   :  { %1088 = vst [vmem:[%s1731_s6] sm:$0xff] %v1543_v9  ;;  %1544 = vpow2.f32 %v1076_v7  ;;  %v1062_v12 = vadd.f32 %v1056_v11, %v1015_v8 }
 0x436   :  { %1546 = vrcp.f32 %v1081_v10 }
 0x437   :  { %v1067_v13 = vadd.f32 %v1063_v46, %v1062_v12 }
 0x439   :  { %v1071_v15 = vsub.f32 0.0, %v1067_v13 }
 0x43b   :  { %v1545_v16 = vpop.eup %1544  ;;  %v1078_v17 = vmul.f32 1.442695, %v1071_v15 }
 0x43c   :  { %v1547_v18 = vpop.eup %1546  ;;  %v1082_v19 = vadd.f32 1.0, %v1545_v16 }
 0x43d   :  { %1089 = vst [vmem:[%s1731_s6 + $0x8] sm:$0xff] %v1547_v18  ;;  %1548 = vpow2.f32 %v1078_v17 }
 0x43e   :  { %1550 = vrcp.f32 %v1082_v19 }
 0x443   :  { %v1549_v20 = vpop.eup %1548 }
 0x444   :  { %v1551_v21 = vpop.eup %1550  ;;  %v1083_v22 = vadd.f32 1.0, %v1549_v20 }
 0x445   :  { %1090 = vst [vmem:[%s1731_s6 + $0x10] sm:$0xff] %v1551_v21 }
 0x446   :  { %1552 = vrcp.f32 %v1083_v22 }
 0x44c   :  { %v1553_v23 = vpop.eup %1552 }
 0x44d   :  { %1091 = vst [vmem:[%s1731_s6 + $0x18] sm:$0xff] %v1553_v23 }
 0x44e   :  { %1096 = vsyncpa [#allocation3], 1 }
 0x44f   :  { %1097 = vsyncpa [#allocation5], 1 }

</bundles_post_ra>
